<compile_context>
chip_gen: v7x
topology: tpu7x:2x2x1
jax: 0.10.0
libtpu: 0.0.40
codegen_flags: <defaults>
</compile_context>

<pallas_src>
import functools
import math

import jax
import jax.numpy as jnp
from jax.experimental import pallas as pl
from jax.experimental.pallas import tpu as pltpu

_VMEM_LIMIT = 48 * 1024 * 1024  # explicit scoped limit, headroom under v7x's 64 MiB


def _pick_block(n, candidates=(512, 256, 128)):
    for c in candidates:
        if n % c == 0:
            return c
    return n  # small / odd sizes: one full-extent block


# --------------------------------------------------------------- linear -----
def _linear_kernel(x_ref, w_ref, b_ref, o_ref):
    # bf16 MXU inputs, f32 accumulation.
    x = x_ref[...].astype(jnp.bfloat16)
    w = w_ref[...]  # already bf16 (cast once in the wrapper)
    acc = jnp.dot(x, w, preferred_element_type=jnp.float32)
    acc = acc + b_ref[...].astype(jnp.float32)
    o_ref[...] = acc.astype(o_ref.dtype)


def _linear(x2, w_bf16, b, *, out_dtype, block_m):
    M, K = x2.shape
    _, N = w_bf16.shape
    return pl.pallas_call(
        _linear_kernel,
        out_shape=jax.ShapeDtypeStruct((M, N), out_dtype),
        grid=(M // block_m,),
        in_specs=[
            pl.BlockSpec((block_m, K), lambda i: (i, 0)),
            # Grid-invariant weights/bias: whole array resident in VMEM,
            # single-buffered (no per-step DMA, no double-buffer waste).
            pl.BlockSpec(memory_space=pltpu.MemorySpace.VMEM),
            pl.BlockSpec(memory_space=pltpu.MemorySpace.VMEM),
        ],
        out_specs=pl.BlockSpec((block_m, N), lambda i: (i, 0)),
        compiler_params=pltpu.CompilerParams(
            dimension_semantics=("parallel",),
            vmem_limit_bytes=_VMEM_LIMIT),
    )(x2, w_bf16, b)


# ------------------------------------------------- flash causal attention ---
def _flash_kernel(q_ref, k_ref, v_ref, o_ref, m_sc, l_sc, acc_sc, *, scale):
    qi = pl.program_id(1)
    ki = pl.program_id(2)

    @pl.when(ki == 0)
    def _init():
        m_sc[...] = jnp.full_like(m_sc, -jnp.inf)
        l_sc[...] = jnp.zeros_like(l_sc)
        acc_sc[...] = jnp.zeros_like(acc_sc)

    # Skip fully-masked (above-diagonal) kv tiles: roughly halves FLOPs.
    @pl.when(ki <= qi)
    def _compute():
        blk_q = q_ref.shape[1]
        blk_k = k_ref.shape[1]

        # Fold 1/sqrt(hd) into q instead of scaling the (tq, tk) score matrix.
        q = (q_ref[0].astype(jnp.float32) * scale).astype(jnp.bfloat16)
        k = k_ref[0]                      # (tk, hd) bf16
        v = v_ref[0]                      # (tk, hd) bf16

        # (tq, tk) scores on the MXU: bf16 in, f32 accumulate.
        s = jax.lax.dot_general(q, k, (((1,), (1,)), ((), ())),
                                preferred_element_type=jnp.float32)

        # Causal mask from global positions (all-true on below-diagonal tiles).
        row = qi * blk_q + jax.lax.broadcasted_iota(jnp.int32, s.shape, 0)
        col = ki * blk_k + jax.lax.broadcasted_iota(jnp.int32, s.shape, 1)
        s = jnp.where(col <= row, s, -1e30)

        # Online (flash) softmax, all statistics in f32.
        m_prev = m_sc[...]
        m_new = jnp.maximum(m_prev, jnp.max(s, axis=-1, keepdims=True))
        alpha = jnp.exp(m_prev - m_new)
        p = jnp.exp(s - m_new)
        l_sc[...] = alpha * l_sc[...] + jnp.sum(p, axis=-1, keepdims=True)
        acc_sc[...] = alpha * acc_sc[...] + jax.lax.dot_general(
            p.astype(jnp.bfloat16), v, (((1,), (0,)), ((), ())),
            preferred_element_type=jnp.float32)
        m_sc[...] = m_new

    # The diagonal tile is the last contributing kv step for this q tile.
    @pl.when(ki == qi)
    def _finalize():
        inv_l = pl.reciprocal(l_sc[...], approx=True)   # EUP, not VALU divide
        o_ref[0] = (acc_sc[...] * inv_l).astype(o_ref.dtype)


def _flash_attention(q, k, v, *, scale, block):
    # q, k, v: (B*n_head, T, hd) bf16.
    BH, T, hd = q.shape
    num = T // block
    kernel = functools.partial(_flash_kernel, scale=scale)
    q_spec = lambda bh, qi, ki: (bh, qi, 0)
    # Clamp the kv block index for skipped (above-diagonal) steps so no
    # redundant DMA is issued for tiles that are never read.
    kv_spec = lambda bh, qi, ki: (bh, jnp.minimum(ki, qi), 0)
    return pl.pallas_call(
        kernel,
        out_shape=jax.ShapeDtypeStruct((BH, T, hd), q.dtype),
        grid=(BH, num, num),
        in_specs=[
            pl.BlockSpec((1, block, hd), q_spec),
            pl.BlockSpec((1, block, hd), kv_spec),
            pl.BlockSpec((1, block, hd), kv_spec),
        ],
        out_specs=pl.BlockSpec((1, block, hd), q_spec),
        scratch_shapes=[
            pltpu.VMEM((block, 1), jnp.float32),   # running max
            pltpu.VMEM((block, 1), jnp.float32),   # running sum
            pltpu.VMEM((block, hd), jnp.float32),  # output accumulator
        ],
        compiler_params=pltpu.CompilerParams(
            dimension_semantics=("parallel", "parallel", "arbitrary"),
            vmem_limit_bytes=_VMEM_LIMIT),
    )(q, k, v)


# ------------------------------------------------------------ full module ---
def causal_self_attention(x, w_qkv, b_qkv, w_proj, b_proj, n_head):
    B, T, C = x.shape
    hd = C // n_head
    scale = 1.0 / math.sqrt(hd)

    # Cast grid-invariant weights to bf16 once (halves HBM/VMEM footprint).
    w_qkv_b = w_qkv.astype(jnp.bfloat16)
    w_proj_b = w_proj.astype(jnp.bfloat16)

    bm = _pick_block(B * T, candidates=(512, 256, 128))
    blk = _pick_block(T, candidates=(256, 128))

    # 1) fused QKV projection: (B*T, C) @ (C, 3C) + b -> bf16 activations.
    qkv = _linear(x.reshape(B * T, C), w_qkv_b, b_qkv,
                  out_dtype=jnp.bfloat16, block_m=bm)

    # 2) head split (wrapper-side layout plumbing only).
    # TODO(synk): pad head_dim / C up to a multiple of 128 lanes (and mask the
    # padding) for fully lane-dense stores when the model dims are not aligned.
    qkv = qkv.reshape(B, T, 3, n_head, hd)
    q = qkv[:, :, 0].transpose(0, 2, 1, 3).reshape(B * n_head, T, hd)
    k = qkv[:, :, 1].transpose(0, 2, 1, 3).reshape(B * n_head, T, hd)
    v = qkv[:, :, 2].transpose(0, 2, 1, 3).reshape(B * n_head, T, hd)

    # 3) flash causal attention over (batch*head, q_tiles, kv_tiles).
    y = _flash_attention(q, k, v, scale=scale, block=blk)

    # 4) merge heads + output projection back to the input dtype.
    y = y.reshape(B, n_head, T, hd).transpose(0, 2, 1, 3).reshape(B * T, C)
    out = _linear(y, w_proj_b, b_proj, out_dtype=x.dtype, block_m=bm)
    return out.reshape(B, T, C)


def _reference(x, w_qkv, b_qkv, w_proj, b_proj, n_head):
    # Pure-JAX f32 reference matching torch F.scaled_dot_product_attention(is_causal=True)
    B, T, C = x.shape
    hd = C // n_head
    qkv = x @ w_qkv + b_qkv[0]
    q, k, v = jnp.split(qkv, 3, axis=-1)
    q = q.reshape(B, T, n_head, hd).transpose(0, 2, 1, 3)
    k = k.reshape(B, T, n_head, hd).transpose(0, 2, 1, 3)
    v = v.reshape(B, T, n_head, hd).transpose(0, 2, 1, 3)
    s = jnp.einsum('bhtd,bhsd->bhts', q, k) / (hd ** 0.5)
    mask = jnp.tril(jnp.ones((T, T), dtype=bool))
    s = jnp.where(mask, s, -jnp.inf)
    p = jax.nn.softmax(s, axis=-1)
    y = jnp.einsum('bhts,bhsd->bhtd', p, v)
    y = y.transpose(0, 2, 1, 3).reshape(B, T, C)
    return y @ w_proj + b_proj[0]


if __name__ == "__main__":
    # GPT-ish small config: n_embd=32, n_head=4, seq=8, batch=2
    B, T, C, n_head = 2, 8, 32, 4

    key = jax.random.PRNGKey(0)
    kx, k1, k2, k3, k4 = jax.random.split(key, 5)
    x = jax.random.normal(kx, (B, T, C), dtype=jnp.float32)
    w_qkv = jax.random.normal(k1, (C, 3 * C), dtype=jnp.float32) * 0.02
    b_qkv = jax.random.normal(k2, (1, 3 * C), dtype=jnp.float32) * 0.02
    w_proj = jax.random.normal(k3, (C, C), dtype=jnp.float32) * 0.02
    b_proj = jax.random.normal(k4, (1, C), dtype=jnp.float32) * 0.02

    y = causal_self_attention(x, w_qkv, b_qkv, w_proj, b_proj, n_head)
    jax.block_until_ready(y)

    y_ref = _reference(x, w_qkv, b_qkv, w_proj, b_proj, n_head)
    err = float(jnp.max(jnp.abs(y - y_ref)))
    # bf16 MXU inputs -> slightly looser tolerance than a pure-f32 kernel.
    assert jnp.allclose(y, y_ref, atol=1e-2, rtol=1e-2), ("max abs err", err)

    print("KERNEL_OK")
</pallas_src>

<mosaic_0001>
module attributes {stable_mosaic.version = 11 : i64} {
  func.func @_linear_kernel(%arg0: i32, %arg1: memref<16x32xf32, #tpu.memory_space<vmem>>, %arg2: memref<32x96xbf16, #tpu.memory_space<vmem>>, %arg3: memref<1x96xf32, #tpu.memory_space<vmem>>, %arg4: memref<16x96xbf16, #tpu.memory_space<vmem>>) attributes {dimension_semantics = [#tpu.dimension_semantics<parallel>], iteration_bounds = array<i64: 1>, scalar_prefetch = 0 : i64, scratch_operands = 0 : i64, tpu.core_type = #tpu.core_type<tc>, window_params = [{transform_indices = @transform_0, window_bounds = array<i64: 16, 32>}, {pipeline_mode = #tpu.pipeline_mode<synchronous>, transform_indices = @transform_1, window_bounds = array<i64: 32, 96>}, {pipeline_mode = #tpu.pipeline_mode<synchronous>, transform_indices = @transform_2, window_bounds = array<i64: 1, 96>}, {transform_indices = @transform_3, window_bounds = array<i64: 16, 96>}]} {
    %c0 = arith.constant 0 : index
    %c0_0 = arith.constant 0 : index
    %0 = vector.load %arg1[%c0, %c0_0] : memref<16x32xf32, #tpu.memory_space<vmem>>, vector<16x32xf32>
    %1 = arith.truncf %0 : vector<16x32xf32> to vector<16x32xbf16>
    %c0_1 = arith.constant 0 : index
    %c0_2 = arith.constant 0 : index
    %2 = vector.load %arg2[%c0_1, %c0_2] : memref<32x96xbf16, #tpu.memory_space<vmem>>, vector<32x96xbf16>
    %cst = arith.constant dense<0.000000e+00> : vector<16x96xf32>
    %3 = tpu.matmul %1, %2, %cst {dimension_numbers = #tpu.dot_dimension_numbers<[1], [0], [0], [1], [0, 0, 1, 1], [], []>} : vector<16x32xbf16>, vector<32x96xbf16>, vector<16x96xf32> -> vector<16x96xf32>
    %c0_3 = arith.constant 0 : index
    %c0_4 = arith.constant 0 : index
    %4 = vector.load %arg3[%c0_3, %c0_4] : memref<1x96xf32, #tpu.memory_space<vmem>>, vector<1x96xf32>
    %5 = vector.broadcast %4 : vector<1x96xf32> to vector<16x96xf32>
    %6 = arith.addf %3, %5 : vector<16x96xf32>
    %7 = arith.truncf %6 : vector<16x96xf32> to vector<16x96xbf16>
    %c0_5 = arith.constant 0 : index
    %c0_6 = arith.constant 0 : index
    %8 = vector.load %arg4[%c0_5, %c0_6] : memref<16x96xbf16, #tpu.memory_space<vmem>>, vector<16x96xbf16>
    tpu.vector_store %arg4[%c0_5, %c0_6], %7 {strides = array<i32>} : memref<16x96xbf16, #tpu.memory_space<vmem>>, vector<16x96xbf16>,
    return
  }
  func.func @transform_0(%arg0: i32) -> (i32, i32) {
    %c0_i32 = arith.constant 0 : i32
    %c0_i32_0 = arith.constant 0 : i32
    return %arg0, %c0_i32 : i32, i32
  }
  func.func @transform_1(%arg0: i32) -> (i32, i32) {
    %c0_i32 = arith.constant 0 : i32
    %c0_i32_0 = arith.constant 0 : i32
    %c0_i32_1 = arith.constant 0 : i32
    return %c0_i32, %c0_i32_0 : i32, i32
  }
  func.func @transform_2(%arg0: i32) -> (i32, i32) {
    %c0_i32 = arith.constant 0 : i32
    %c0_i32_0 = arith.constant 0 : i32
    %c0_i32_1 = arith.constant 0 : i32
    return %c0_i32, %c0_i32_0 : i32, i32
  }
  func.func @transform_3(%arg0: i32) -> (i32, i32) {
    %c0_i32 = arith.constant 0 : i32
    %c0_i32_0 = arith.constant 0 : i32
    return %arg0, %c0_i32 : i32, i32
  }
}

</mosaic_0001>

<bundles_post_ra>
// kernel: tpu_custom_call.1
= control target key start
LH: loop header
LB: loop body
LE: loop exit
PB: predicated region body
PF: predicated region fallthrough
CT: control target
= control target key end

     0   :  { %8 = vsyncpa [#allocation3], 0  ;;  %s320_s0 = inlined_call_operand.hbm [shape: f32[16,32], index: 0, kind: input, shape index: {}]   ;;  %s321_s1 = inlined_call_operand.hbm [shape: bf16[32,96], index: 1, kind: input, shape index: {}]   ;;  %s322_s2 = inlined_call_operand.vmem [shape: f32[1,96], index: 2, kind: input, shape index: {}]   ;;  %s323_s3 = inlined_call_operand.hbm [shape: bf16[16,96], index: 3, kind: output, shape index: {}]  }
   0x1   :  { %9 = vsyncpa [#allocation6], 0 }
   0x2   :  { %10 = vsyncpa [#allocation4], 0  ;;  %s246_s12 = smov [#allocation2]   ;;  %s174_s16 = scalar_lea.hbm %s320_s0, 256 }
   0x3   :  { %s16_s13 = sshll.u32 %s246_s12, 4  ;;  %p175_p0 = scmp.ne.s32.totalorder %s320_s0, %s174_s16  ;;  %s17_s13 = int_to_ptr.vmem [resolvable:$true] %s16_s13 }
   0x4   :  { %p178_p1 = scmp.lt.u32.totalorder %s174_s16, %s320_s0 }
   0x6   :  { %p180_p2 = pnand %p178_p1, %p175_p0 }
   0x8   :  { %183 = shalt.err (!%p180_p2)
}
   0x9   :  { %s184_s21 = scalar_lea.vmem %s17_s13, 256  ;;  %p189_p4 = scmp.lt.s32.totalorder %s17_s13, %s17_s13 }
   0xa   :  { %p185_p3 = scmp.ne.s32.totalorder %s17_s13, %s184_s21  ;;  %p190_p5 = scmp.lt.s32.totalorder %s184_s21, %s184_s21 }
   0xc   :  { %p191_p6 = por %p190_p5, %p189_p4 }
   0xe   :  { %p192_p7 = pnand %p191_p6, %p185_p3 }
  0x10   :  { %195 = shalt.err (!%p192_p7)
}
  0x11   :  { %s247_s22 = smov 128   ;;  %s248_s23 = smov 8  }
  0x12   :  { %22 = dma.hbm_to_vmem [thread:$0]  %s320_s0, 256, %s17_s13, [#allocation3], %s247_s22, %s247_s22, %s248_s23  }
  0x13   :  { %s249_s26 = smov [#allocation5]   ;;  %s196_s30 = scalar_lea.hbm %s321_s1, 256 }
  0x14   :  { %s28_s27 = sshll.u32 %s249_s26, 4  ;;  %p197_p8 = scmp.ne.s32.totalorder %s321_s1, %s196_s30  ;;  %s29_s27 = int_to_ptr.vmem [resolvable:$true] %s28_s27 }
  0x15   :  { %p200_p9 = scmp.lt.u32.totalorder %s196_s30, %s321_s1 }
  0x17   :  { %p202_p10 = pnand %p200_p9, %p197_p8 }
  0x19   :  { %205 = shalt.err (!%p202_p10)
}
  0x1a   :  { %s206_s8 = scalar_lea.vmem %s29_s27, 256  ;;  %p211_p12 = scmp.lt.s32.totalorder %s29_s27, %s29_s27 }
  0x1b   :  { %p207_p11 = scmp.ne.s32.totalorder %s29_s27, %s206_s8  ;;  %p212_p13 = scmp.lt.s32.totalorder %s206_s8, %s206_s8 }
  0x1d   :  { %p213_p0 = por %p212_p13, %p211_p12 }
  0x1f   :  { %p214_p1 = pnand %p213_p0, %p207_p11 }
  0x21   :  { %217 = shalt.err (!%p214_p1)
}
  0x22   :  { %s250_s0 = smov 64   ;;  %s251_s9 = smov 4  }
  0x23   :  { %34 = dma.hbm_to_vmem [thread:$0]  %s321_s1, 256, %s29_s27, [#allocation6], %s250_s0, %s250_s0, %s251_s9  }
  0x24   :  { %240 = dma.done.wait [#allocation3], 256  }
  0x25   :  { %241 = vsyncadd [#allocation3], 4294967040 }
  0x26   :  { %242 = dma.done.wait [#allocation6], 256  }
  0x27   :  { %243 = vsyncadd [#allocation6], 4294967040  ;;  %v252_v0 = vmov 0.0   ;;  %vm253_vm0 = vmmov 0   ;;  %v172_v1 = vld [vmem:[#allocation5] sm:$0xff]   ;;  %v173_v2 = vld [vmem:[#allocation5 + $0x8] sm:$0xff]  }
  0x28   :  { %155 = vmatprep.subr.bf16.mxu0 %v252_v0  ;;  %159 = vmatprep.mubr.msk.bf16.mxu0 %vm253_vm0, %v252_v0  ;;  %v44_v3 = vld [vmem:[#allocation2] sm:$0xff]  ;;  %v45_v4 = vld [vmem:[#allocation2 + $0x8] sm:$0xff]  ;;  %vm70_vm1 = vcmask 261120   ;;  %vm123_vm2 = vcmask 781312   ;;  %s254_s13 = smov [#allocation7]  }
  0x29   :  { %156 = vmatpush3.bf16.msra.mxu0 %v172_v1  ;;  %v46_v5 = vpack.c.bf16 %v45_v4, %v44_v3  ;;  %v144_v6 = vld [vmem:[%s322_s2] ss:$0 sm:$0xff]  ;;  %s131_s14 = sshll.u32 %s254_s13, 4  ;;  %s132_s14 = int_to_ptr.vmem [resolvable:$true] %s131_s14 }
  0x2a   :  { %157 = vmatprep.subr.bf16.mxu0 %v252_v0  ;;  %s218_s15 = scalar_lea.vmem %s132_s14, 128  ;;  %p223_p3 = scmp.lt.s32.totalorder %s132_s14, %s132_s14 }
  0x2b   :  { %p219_p2 = scmp.ne.s32.totalorder %s132_s14, %s218_s15  ;;  %p224_p4 = scmp.lt.s32.totalorder %s218_s15, %s218_s15 }
  0x2d   :  { %158 = vmatpush3.bf16.msra.mxu0 %v173_v2  ;;  %p225_p5 = por %p224_p4, %p223_p3 }
  0x2f   :  { %p226_p6 = pnand %p225_p5, %p219_p2 }
  0x30   :  { %160 = vmatmul.mubr.msk.bf16.vlgmr.msra.gmra.mrb[0].mxu0 %vm70_vm1, %v46_v5 }
 0x103   :  { %v108_v7 = vpop.f32.mrb[0].mxu0 }
 0x104   :  { %v109_v8 = vadd.f32 %v144_v6, %v108_v7  ;;  %v161_v9 = vpop.f32.mrb[1].mxu0 }
 0x105   :  { %v111_v10 = vpop.f32.mrb[2].mxu0 }
 0x106   :  { %v150_v11 = vpack.c.bf16 %v109_v8, %v109_v8  ;;  %v112_v12 = vadd.f32 %v144_v6, %v111_v10  ;;  %v162_v13 = vpop.f32.mrb[3].mxu0 }
 0x108   :  { %v151_v14 = vpack.c.bf16 %v112_v12, %v112_v12  ;;  %124 = vst.msk [vmem:[#allocation7] sm:$0xf] %vm123_vm2, %v150_v11 }
 0x10a   :  { %125 = vst.msk [vmem:[#allocation7 + $0x4] sm:$0xf] %vm123_vm2, %v151_v14 }
 0x10b   :  { %229 = shalt.err (!%p226_p6)
}
 0x10c   :  { %s230_s17 = scalar_lea.hbm %s323_s3, 128 }
 0x10d   :  { %p231_p7 = scmp.ne.s32.totalorder %s323_s3, %s230_s17  ;;  %p234_p8 = scmp.lt.u32.totalorder %s230_s17, %s323_s3 }
 0x10f   :  { %p236_p9 = pnand %p234_p8, %p231_p7 }
 0x111   :  { %239 = shalt.err (!%p236_p9)
}
 0x112   :  { %137 = dma.vmem_to_hbm [thread:$0]  %s132_s14, 128, %s323_s3, [#allocation4], %s250_s0, %s250_s0, %s251_s9  }
 0x113   :  { %244 = dma.done.wait [#allocation4], 128  }
 0x114   :  { %245 = vsyncadd [#allocation4], 4294967168 }
 0x115   :  { %141 = vsyncpa [#allocation3], 1 }
 0x116   :  { %142 = vsyncpa [#allocation6], 1 }
 0x117   :  { %143 = vsyncpa [#allocation4], 1 }

</bundles_post_ra>
